<compile_context>
chip_gen: v5e
topology: v5e:2x2
jax: 0.10.0
libtpu: 0.0.40
codegen_flags: <defaults>
</compile_context>

<pallas_src>
import functools

import jax
import jax.numpy as jnp
from jax.experimental import pallas as pl
from jax.experimental.pallas import tpu as pltpu


def _round_up(x, m):
    return ((x + m - 1) // m) * m


def _sublane(dtype):
    # Minimum second-minor tile per dtype packing: f32 -> 8, bf16 -> 16, 8-bit -> 32.
    return {4: 8, 2: 16, 1: 32}[jnp.dtype(dtype).itemsize]


def _pick_tile(limit, total, lane=128):
    """Largest multiple of `lane` that divides `total` and is <= limit.

    `total` is always a multiple of `lane` (padded in prep), so 128 always works.
    """
    limit = max(lane, min(limit, total))
    cand = (limit // lane) * lane
    while cand > lane and total % cand != 0:
        cand -= lane
    return cand


def _default_vmem_limit_bytes():
    # Raise the scoped-VMEM ceiling above the compiler default (16/32 MiB) while
    # leaving headroom below physical VMEM (128 MiB v5e/v6e, 64 MiB/TC v7x).
    try:
        cap = int(pltpu.get_tpu_info().vmem_capacity_bytes)
    except Exception:
        return None  # fall back to the compiler default
    return max(32 << 20, min(cap - (12 << 20), 100 << 20))


def _multilora_kernel(x_ref, w_ref, wd_ref, wu_ref, o_ref, acc_ref, h_ref, *, tk):
    """Grid: (i over M tiles ["parallel"], j over N tiles, k over K tiles).

    j and k are sequential ("arbitrary") per core: the h scratch written at
    j==0 must be valid for every later N tile, and acc accumulates over k.
    """
    j = pl.program_id(1)
    k = pl.program_id(2)
    nk = pl.num_programs(2)

    x = x_ref[...]                                                     # (tm, tk)

    @pl.when(k == 0)
    def _():
        acc_ref[...] = jnp.zeros_like(acc_ref)

    # Base GEMM partial sum for this K slice (f32 accumulation).
    acc_ref[...] += jnp.dot(x, w_ref[...], preferred_element_type=jnp.float32)

    # LoRA down projection depends only on the M tile: accumulate it (f32) over
    # k during the first N step and reuse it for every other N tile.
    @pl.when(j == 0)
    def _():
        @pl.when(k == 0)
        def _():
            h_ref[...] = jnp.zeros_like(h_ref)

        koff = pl.multiple_of(k * tk, tk)
        wd = wd_ref[pl.ds(koff, tk), :]                                # (tk, R_pad)
        h_ref[...] += jnp.dot(x, wd, preferred_element_type=jnp.float32)

    # Finalize: add the (scale-folded) LoRA up projection and store once.
    @pl.when(k == nk - 1)
    def _():
        lora = jnp.dot(h_ref[...].astype(x.dtype), wu_ref[...],
                       preferred_element_type=jnp.float32)             # (tm, tn)
        o_ref[...] = (acc_ref[...] + lora).astype(o_ref.dtype)


def prepare_multi_lora_weights(w, lora_down_ws, lora_up_ws, scale_logits, *,
                               r_pad_to=128, n_pad_to=128, k_pad_to=128,
                               compute_dtype=jnp.bfloat16):
    """One-time (weight-stationary) preparation.

      - softmax over the 4-way scale, folded into the up weights (in f32),
      - branch concat along the rank axis, transposes to row-major GEMM layout,
      - zero-padding of rank / K / N axes to lane-dense multiples of 128,
      - cast to the compute dtype (bf16 by default; f32 accumulation in-kernel).

    Returns (wt_pad:(K_pad,N_pad), wdt_pad:(K_pad,R_pad), wut_pad:(R_pad,N_pad), N).
    """
    N, K = w.shape

    scale = jax.nn.softmax(scale_logits.astype(jnp.float32))              # (4,)
    wd_all = jnp.concatenate(
        [wd.astype(jnp.float32) for wd in lora_down_ws], axis=0)          # (R, K)
    # Fold the softmax scale into the up-projection weights (per branch).
    wu_scaled = jnp.concatenate(
        [wu.astype(jnp.float32) * scale[i] for i, wu in enumerate(lora_up_ws)],
        axis=1)                                                           # (N, R)

    R = wd_all.shape[0]
    R_pad = _round_up(max(R, 1), r_pad_to)
    N_pad = _round_up(N, n_pad_to)
    K_pad = _round_up(K, k_pad_to)

    wt = jnp.pad(jnp.transpose(w.astype(jnp.float32)),
                 ((0, K_pad - K), (0, N_pad - N)))                        # (K_pad, N_pad)
    wdt = jnp.pad(jnp.transpose(wd_all),
                  ((0, K_pad - K), (0, R_pad - R)))                       # (K_pad, R_pad)
    wut = jnp.pad(jnp.transpose(wu_scaled),
                  ((0, R_pad - R), (0, N_pad - N)))                       # (R_pad, N_pad)

    return (wt.astype(compute_dtype), wdt.astype(compute_dtype),
            wut.astype(compute_dtype), N)


def multi_lora_linear(x, wt_pad, wdt_pad, wut_pad, n_out, *,
                      tm=512, tn=512, tk=512, vmem_limit_bytes=None):
    """x: (..., K). Prepared weights from prepare_multi_lora_weights.

    Tile guidance: v6e large-M -> tm up to ~1024; v7x -> tm ~512 (K is tiled so
    VMEM no longer scales with K); v5e -> tm 256-512 is already compute-bound.
    """
    *lead, K = x.shape
    out_dtype = x.dtype

    # Compute dtype is defined by the prepared weights (no silent mixed precision).
    compute_dtype = wt_pad.dtype
    assert wdt_pad.dtype == compute_dtype and wut_pad.dtype == compute_dtype, (
        "prepared weights must all share one compute dtype")

    K_pad, N_pad = wt_pad.shape
    R_pad = wdt_pad.shape[1]
    assert wdt_pad.shape[0] == K_pad and wut_pad.shape == (R_pad, N_pad)
    assert K <= K_pad

    x2 = x.reshape(-1, K).astype(compute_dtype)
    M = x2.shape[0]
    if K_pad != K:
        x2 = jnp.pad(x2, ((0, 0), (0, K_pad - K)))

    # M tile: clamp to problem size, rounded to the dtype sublane packing so all
    # loads/stores stay unmasked even for small M.
    sub = _sublane(compute_dtype)
    tm = max(sub, min(tm, _round_up(M, sub)))
    tm = _round_up(tm, sub)
    M_pad = _round_up(M, tm)
    if M_pad != M:
        x2 = jnp.pad(x2, ((0, M_pad - M), (0, 0)))

    # N / K tiles: lane-dense multiples of 128 that divide the padded extents, so
    # the (weight-stationary) prepared weights never need per-call re-padding.
    tn = _pick_tile(tn, N_pad)
    tk = _pick_tile(tk, K_pad)

    if vmem_limit_bytes is None:
        vmem_limit_bytes = _default_vmem_limit_bytes()

    grid = (M_pad // tm, N_pad // tn, K_pad // tk)
    kernel = functools.partial(_multilora_kernel, tk=tk)

    out = pl.pallas_call(
        kernel,
        out_shape=jax.ShapeDtypeStruct((M_pad, N_pad), out_dtype),
        grid=grid,
        in_specs=[
            pl.BlockSpec((tm, tk), lambda i, j, k: (i, k)),        # activations
            pl.BlockSpec((tk, tn), lambda i, j, k: (k, j)),        # base W^T tile
            pl.BlockSpec((K_pad, R_pad), lambda i, j, k: (0, 0)),  # LoRA down, VMEM-resident (DMA'd once)
            pl.BlockSpec((R_pad, tn), lambda i, j, k: (0, j)),     # LoRA up (scale folded)
        ],
        out_specs=pl.BlockSpec((tm, tn), lambda i, j, k: (i, j)),
        scratch_shapes=[
            pltpu.VMEM((tm, tn), jnp.float32),     # base f32 accumulator (over k)
            pltpu.VMEM((tm, R_pad), jnp.float32),  # LoRA low-rank intermediate (over k, reused over j)
        ],
        compiler_params=pltpu.CompilerParams(
            # j and k MUST stay sequential per core: h scratch (written at j==0)
            # is reused for j>0, and acc accumulates across k. Only the M axis
            # is megacore-parallel.
            dimension_semantics=("parallel", "arbitrary", "arbitrary"),
            vmem_limit_bytes=vmem_limit_bytes,
        ),
    )(x2, wt_pad, wdt_pad, wut_pad)

    return out[:M, :n_out].reshape(*lead, n_out)


def reference(x, w, lora_down_ws, lora_up_ws, scale_logits):
    scale = jax.nn.softmax(scale_logits)
    out = x @ w.T
    for i, (wd, wu) in enumerate(zip(lora_down_ws, lora_up_ws)):
        out = out + ((x @ wd.T) @ wu.T) * scale[i]
    return out


if __name__ == "__main__":
    key = jax.random.PRNGKey(0)
    in_features, out_features = 32, 32
    r = [1, 2, 4, 8]
    batch, seq = 2, 8

    k_x, k_w, k_s, *k_lora = jax.random.split(key, 3 + 2 * len(r))

    x = jax.random.normal(k_x, (batch, seq, in_features), dtype=jnp.float32)

    # base linear weight (PyTorch default: uniform(-1/sqrt(K), 1/sqrt(K)))
    bound = 1.0 / (in_features ** 0.5)
    w = jax.random.uniform(k_w, (out_features, in_features),
                           minval=-bound, maxval=bound, dtype=jnp.float32)

    # lora_down_i ~ Normal(0, 1/r_i)  (matches nn.init.normal_(std=1/i))
    lora_down_ws = [
        jax.random.normal(k_lora[2 * i], (ri, in_features), dtype=jnp.float32) / ri
        for i, ri in enumerate(r)
    ]
    # __init__ zeros lora_up; use small random values so the LoRA path is
    # actually exercised / numerically verified (forward semantics unchanged).
    lora_up_ws = [
        0.1 * jax.random.normal(k_lora[2 * i + 1], (out_features, ri), dtype=jnp.float32)
        for i, ri in enumerate(r)
    ]
    # scale parameter (zeros in __init__ -> softmax = 0.25 each); use small
    # random logits so the softmax weighting is non-trivial in the check.
    scale_logits = 0.5 * jax.random.normal(k_s, (4,), dtype=jnp.float32)

    ref = reference(x, w, lora_down_ws, lora_up_ws, scale_logits)

    # f32 compute path: tight check against the pure-JAX reference.
    prep32 = prepare_multi_lora_weights(
        w, lora_down_ws, lora_up_ws, scale_logits, compute_dtype=jnp.float32)
    out32 = jax.block_until_ready(multi_lora_linear(x, *prep32))
    assert out32.shape == (batch, seq, out_features)
    assert jnp.allclose(out32, ref, rtol=1e-5, atol=1e-5), "f32 mismatch vs reference"

    # bf16 compute path (production default): dtype-aware tolerance.
    prep16 = prepare_multi_lora_weights(w, lora_down_ws, lora_up_ws, scale_logits)
    out16 = jax.block_until_ready(multi_lora_linear(x, *prep16))
    assert out16.shape == (batch, seq, out_features)
    assert jnp.allclose(out16, ref, rtol=2e-2, atol=2e-2), "bf16 mismatch vs reference"

    print("KERNEL_OK")
</pallas_src>

<mosaic_0001>
module attributes {stable_mosaic.version = 11 : i64} {
  func.func @_multilora_kernel(%arg0: i32, %arg1: i32, %arg2: i32, %arg3: memref<16x128xf32, #tpu.memory_space<vmem>>, %arg4: memref<128x128xf32, #tpu.memory_space<vmem>>, %arg5: memref<128x128xf32, #tpu.memory_space<vmem>>, %arg6: memref<128x128xf32, #tpu.memory_space<vmem>>, %arg7: memref<16x128xf32, #tpu.memory_space<vmem>>, %arg8: memref<16x128xf32, #tpu.memory_space<vmem>>, %arg9: memref<16x128xf32, #tpu.memory_space<vmem>>) attributes {dimension_semantics = [#tpu.dimension_semantics<parallel>, #tpu.dimension_semantics<arbitrary>, #tpu.dimension_semantics<arbitrary>], iteration_bounds = array<i64: 1, 1, 1>, scalar_prefetch = 0 : i64, scratch_operands = 2 : i64, tpu.core_type = #tpu.core_type<tc>, window_params = [{transform_indices = @transform_0, window_bounds = array<i64: 16, 128>}, {transform_indices = @transform_1, window_bounds = array<i64: 128, 128>}, {pipeline_mode = #tpu.pipeline_mode<synchronous>, transform_indices = @transform_2, window_bounds = array<i64: 128, 128>}, {transform_indices = @transform_3, window_bounds = array<i64: 128, 128>}, {transform_indices = @transform_4, window_bounds = array<i64: 16, 128>}]} {
    %c0 = arith.constant 0 : index
    %c0_0 = arith.constant 0 : index
    %0 = vector.load %arg3[%c0, %c0_0] : memref<16x128xf32, #tpu.memory_space<vmem>>, vector<16x128xf32>
    %c0_i32 = arith.constant 0 : i32
    %1 = arith.cmpi eq, %arg2, %c0_i32 : i32
    %2 = arith.extui %1 : i1 to i32
    %c0_i32_1 = arith.constant 0 : i32
    %3 = arith.cmpi ne, %2, %c0_i32_1 : i32
    scf.if %3 {
      %cst_12 = arith.constant 0.000000e+00 : f32
      %15 = vector.broadcast %cst_12 : f32 to vector<16x128xf32>
      %c0_13 = arith.constant 0 : index
      %c0_14 = arith.constant 0 : index
      %16 = vector.load %arg8[%c0_13, %c0_14] : memref<16x128xf32, #tpu.memory_space<vmem>>, vector<16x128xf32>
      tpu.vector_store %arg8[%c0_13, %c0_14], %15 {strides = array<i32>} : memref<16x128xf32, #tpu.memory_space<vmem>>, vector<16x128xf32>,
    } else {
    }
    %c0_2 = arith.constant 0 : index
    %c0_3 = arith.constant 0 : index
    %4 = vector.load %arg8[%c0_2, %c0_3] : memref<16x128xf32, #tpu.memory_space<vmem>>, vector<16x128xf32>
    %c0_4 = arith.constant 0 : index
    %c0_5 = arith.constant 0 : index
    %5 = vector.load %arg4[%c0_4, %c0_5] : memref<128x128xf32, #tpu.memory_space<vmem>>, vector<128x128xf32>
    %cst = arith.constant dense<0.000000e+00> : vector<16x128xf32>
    %6 = tpu.matmul %0, %5, %cst {dimension_numbers = #tpu.dot_dimension_numbers<[1], [0], [0], [1], [0, 0, 1, 1], [], []>} : vector<16x128xf32>, vector<128x128xf32>, vector<16x128xf32> -> vector<16x128xf32>
    %7 = arith.addf %4, %6 : vector<16x128xf32>
    %c0_6 = arith.constant 0 : index
    %c0_7 = arith.constant 0 : index
    %8 = vector.load %arg8[%c0_6, %c0_7] : memref<16x128xf32, #tpu.memory_space<vmem>>, vector<16x128xf32>
    tpu.vector_store %arg8[%c0_6, %c0_7], %7 {strides = array<i32>} : memref<16x128xf32, #tpu.memory_space<vmem>>, vector<16x128xf32>,
    %c0_i32_8 = arith.constant 0 : i32
    %9 = arith.cmpi eq, %arg1, %c0_i32_8 : i32
    %10 = arith.extui %9 : i1 to i32
    %c0_i32_9 = arith.constant 0 : i32
    %11 = arith.cmpi ne, %10, %c0_i32_9 : i32
    scf.if %11 {
      %c0_i32_12 = arith.constant 0 : i32
      %15 = arith.cmpi eq, %arg2, %c0_i32_12 : i32
      %16 = arith.extui %15 : i1 to i32
      %c0_i32_13 = arith.constant 0 : i32
      %17 = arith.cmpi ne, %16, %c0_i32_13 : i32
      scf.if %17 {
        %cst_20 = arith.constant 0.000000e+00 : f32
        %26 = vector.broadcast %cst_20 : f32 to vector<16x128xf32>
        %c0_21 = arith.constant 0 : index
        %c0_22 = arith.constant 0 : index
        %27 = vector.load %arg9[%c0_21, %c0_22] : memref<16x128xf32, #tpu.memory_space<vmem>>, vector<16x128xf32>
        tpu.vector_store %arg9[%c0_21, %c0_22], %26 {strides = array<i32>} : memref<16x128xf32, #tpu.memory_space<vmem>>, vector<16x128xf32>,
      } else {
      }
      %c128_i32 = arith.constant 128 : i32
      %18 = arith.muli %arg2, %c128_i32 : i32
      %19 = tpu.assume_multiple %18, 128 : i32
      %20 = arith.index_cast %19 : i32 to index
      %c0_14 = arith.constant 0 : index
      %21 = vector.load %arg5[%20, %c0_14] : memref<128x128xf32, #tpu.memory_space<vmem>>, vector<128x128xf32>
      %c0_15 = arith.constant 0 : index
      %c0_16 = arith.constant 0 : index
      %22 = vector.load %arg9[%c0_15, %c0_16] : memref<16x128xf32, #tpu.memory_space<vmem>>, vector<16x128xf32>
      %cst_17 = arith.constant dense<0.000000e+00> : vector<16x128xf32>
      %23 = tpu.matmul %0, %21, %cst_17 {dimension_numbers = #tpu.dot_dimension_numbers<[1], [0], [0], [1], [0, 0, 1, 1], [], []>} : vector<16x128xf32>, vector<128x128xf32>, vector<16x128xf32> -> vector<16x128xf32>
      %24 = arith.addf %22, %23 : vector<16x128xf32>
      %c0_18 = arith.constant 0 : index
      %c0_19 = arith.constant 0 : index
      %25 = vector.load %arg9[%c0_18, %c0_19] : memref<16x128xf32, #tpu.memory_space<vmem>>, vector<16x128xf32>
      tpu.vector_store %arg9[%c0_18, %c0_19], %24 {strides = array<i32>} : memref<16x128xf32, #tpu.memory_space<vmem>>, vector<16x128xf32>,
    } else {
    }
    %c0_i32_10 = arith.constant 0 : i32
    %12 = arith.cmpi eq, %arg2, %c0_i32_10 : i32
    %13 = arith.extui %12 : i1 to i32
    %c0_i32_11 = arith.constant 0 : i32
    %14 = arith.cmpi ne, %13, %c0_i32_11 : i32
    scf.if %14 {
      %c0_12 = arith.constant 0 : index
      %c0_13 = arith.constant 0 : index
      %15 = vector.load %arg9[%c0_12, %c0_13] : memref<16x128xf32, #tpu.memory_space<vmem>>, vector<16x128xf32>
      %c0_14 = arith.constant 0 : index
      %c0_15 = arith.constant 0 : index
      %16 = vector.load %arg6[%c0_14, %c0_15] : memref<128x128xf32, #tpu.memory_space<vmem>>, vector<128x128xf32>
      %cst_16 = arith.constant dense<0.000000e+00> : vector<16x128xf32>
      %17 = tpu.matmul %15, %16, %cst_16 {dimension_numbers = #tpu.dot_dimension_numbers<[1], [0], [0], [1], [0, 0, 1, 1], [], []>} : vector<16x128xf32>, vector<128x128xf32>, vector<16x128xf32> -> vector<16x128xf32>
      %c0_17 = arith.constant 0 : index
      %c0_18 = arith.constant 0 : index
      %18 = vector.load %arg8[%c0_17, %c0_18] : memref<16x128xf32, #tpu.memory_space<vmem>>, vector<16x128xf32>
      %19 = arith.addf %18, %17 : vector<16x128xf32>
      %c0_19 = arith.constant 0 : index
      %c0_20 = arith.constant 0 : index
      %20 = vector.load %arg7[%c0_19, %c0_20] : memref<16x128xf32, #tpu.memory_space<vmem>>, vector<16x128xf32>
      tpu.vector_store %arg7[%c0_19, %c0_20], %19 {strides = array<i32>} : memref<16x128xf32, #tpu.memory_space<vmem>>, vector<16x128xf32>,
    } else {
    }
    return
  }
  func.func @transform_0(%arg0: i32, %arg1: i32, %arg2: i32) -> (i32, i32) {
    %c0_i32 = arith.constant 0 : i32
    return %arg0, %arg2 : i32, i32
  }
  func.func @transform_1(%arg0: i32, %arg1: i32, %arg2: i32) -> (i32, i32) {
    %c0_i32 = arith.constant 0 : i32
    return %arg2, %arg1 : i32, i32
  }
  func.func @transform_2(%arg0: i32, %arg1: i32, %arg2: i32) -> (i32, i32) {
    %c0_i32 = arith.constant 0 : i32
    %c0_i32_0 = arith.constant 0 : i32
    %c0_i32_1 = arith.constant 0 : i32
    return %c0_i32, %c0_i32_0 : i32, i32
  }
  func.func @transform_3(%arg0: i32, %arg1: i32, %arg2: i32) -> (i32, i32) {
    %c0_i32 = arith.constant 0 : i32
    %c0_i32_0 = arith.constant 0 : i32
    return %c0_i32, %arg1 : i32, i32
  }
  func.func @transform_4(%arg0: i32, %arg1: i32, %arg2: i32) -> (i32, i32) {
    %c0_i32 = arith.constant 0 : i32
    return %arg0, %arg1 : i32, i32
  }
}

</mosaic_0001>

<bundles_post_ra>
// kernel: tpu_custom_call.1
= control target key start
LH: loop header
LB: loop body
LE: loop exit
PB: predicated region body
PF: predicated region fallthrough
CT: control target
= control target key end

     0   :  { %9 = vsyncpa [#allocation5], 0  ;;  %s474_s0 = inlined_call_operand.hbm [shape: f32[16,128], index: 0, kind: input, shape index: {}]   ;;  %s475_s1 = inlined_call_operand.hbm [shape: f32[128,128], index: 1, kind: input, shape index: {}]   ;;  %s476_s2 = inlined_call_operand.hbm [shape: f32[128,128], index: 2, kind: input, shape index: {}]   ;;  %s477_s3 = inlined_call_operand.hbm [shape: f32[128,128], index: 3, kind: input, shape index: {}]   ;;  %s478_s4 = inlined_call_operand.hbm [shape: f32[16,128], index: 4, kind: output, shape index: {}]  }
   0x1   :  { %10 = vsyncpa [#allocation8], 0 }
   0x2   :  { %11 = vsyncpa [#allocation11], 0 }
   0x3   :  { %12 = vsyncpa [#allocation6], 0  ;;  %s30_s17 = sshll.u32 %s475_s1, 4  ;;  %s412_s18 = smov [#allocation7]   ;;  %s31_s17 = int_to_ptr.hbm [resolvable:$true] %s30_s17 }
   0x4   :  { %s32_s19 = sshll.u32 %s412_s18, 4  ;;  %s17_s22 = sshll.u32 %s474_s0, 4  ;;  %s33_s19 = int_to_ptr.vmem [resolvable:$true] %s32_s19  ;;  %s18_s22 = int_to_ptr.hbm [resolvable:$true] %s17_s22 }
   0x5   :  { %s413_s23 = smov 128   ;;  %s414_s24 = smov 8  }
   0x6   :  { %38 = dma.hbm_to_vmem [thread:$0]  %s31_s17, 2048, %s33_s19, [#allocation8], %s413_s23, %s413_s23, %s414_s24  }
   0x7   :  { %s415_s25 = smov [#allocation4]   ;;  %s43_s1 = sshll.u32 %s476_s2, 4  ;;  %s44_s1 = int_to_ptr.hbm [resolvable:$true] %s43_s1 }
   0x8   :  { %s19_s26 = sshll.u32 %s415_s25, 4  ;;  %s56_s30 = sshll.u32 %s477_s3, 4  ;;  %s20_s26 = int_to_ptr.vmem [resolvable:$true] %s19_s26  ;;  %s57_s30 = int_to_ptr.hbm [resolvable:$true] %s56_s30 }
   0x9   :  { %25 = dma.hbm_to_vmem [thread:$0]  %s18_s22, 256, %s20_s26, [#allocation5], %s413_s23, %s413_s23, %s414_s24  }
   0xa   :  { %s416_s5 = smov [#allocation9]   ;;  %s417_s7 = smov [#allocation10]  }
   0xb   :  { %s45_s6 = sshll.u32 %s416_s5, 4  ;;  %s58_s2 = sshll.u32 %s417_s7, 4  ;;  %s46_s6 = int_to_ptr.vmem [resolvable:$true] %s45_s6  ;;  %s59_s2 = int_to_ptr.vmem [resolvable:$true] %s58_s2 }
   0xc   :  { %51 = dma.hbm_to_vmem [thread:$0]  %s44_s1, 2048, %s46_s6, [#allocation8], %s413_s23, %s413_s23, %s414_s24  }
   0xd   :  { %64 = dma.hbm_to_vmem [thread:$0]  %s57_s30, 2048, %s59_s2, [#allocation11], %s413_s23, %s413_s23, %s414_s24  }
   0xe   :  { %404 = dma.done.wait [#allocation5], 256  }
   0xf   :  { %405 = vsyncadd [#allocation5], 4294967040 }
  0x10   :  { %406 = dma.done.wait [#allocation8], 4096  }
  0x11   :  { %407 = vsyncadd [#allocation8], 4294963200 }
  0x12   :  { %408 = dma.done.wait [#allocation11], 2048  }
  0x13   :  { %409 = vsyncadd [#allocation11], 4294965248  ;;  %v160_v0 = vld [vmem:[#allocation9 + $0x78] sm:$0xff]  ;;  %v159_v1 = vld [vmem:[#allocation9 + $0x70] sm:$0xff]  ;;  %s418_s3 = smov [#allocation12]   ;;  %s246_s11 = sshll.u32 %s478_s4, 4  ;;  %s247_s11 = int_to_ptr.hbm [resolvable:$true] %s246_s11 }
  0x14   :  { %163 = vmatpush.msra.mxu1 %v160_v0  ;;  %v158_v2 = vld [vmem:[#allocation9 + $0x68] sm:$0xff]  ;;  %v157_v3 = vld [vmem:[#allocation9 + $0x60] sm:$0xff]  ;;  %v156_v4 = vld [vmem:[#allocation9 + $0x58] sm:$0xff]  ;;  %s244_s8 = sshll.u32 %s418_s3, 4  ;;  %s245_s8 = int_to_ptr.vmem [resolvable:$true] %s244_s8 }
  0x15   :  { %v155_v5 = vld [vmem:[#allocation9 + $0x50] sm:$0xff]  ;;  %v210_v6 = vld [vmem:[#allocation10 + $0x78] sm:$0xff]  ;;  %v154_v10 = vld [vmem:[#allocation9 + $0x48] sm:$0xff] }
  0x16   :  { %164 = vmatpush.msra.mxu1 %v159_v1  ;;  %v209_v7 = vld [vmem:[#allocation10 + $0x70] sm:$0xff]  ;;  %211 = vmatpush.msra.mxu2 %v210_v6  ;;  %v106_v8 = vld [vmem:[#allocation7 + $0x78] sm:$0xff]  ;;  %v208_v11 = vld [vmem:[#allocation10 + $0x68] sm:$0xff] }
  0x17   :  { %v105_v9 = vld [vmem:[#allocation7 + $0x70] sm:$0xff]  ;;  %107 = vmatpush.msra.mxu0 %v106_v8  ;;  %261 = vmatpush.msra.mxu3 %v106_v8  ;;  %v104_v12 = vld [vmem:[#allocation7 + $0x68] sm:$0xff]  ;;  %v153_v13 = vld [vmem:[#allocation9 + $0x40] sm:$0xff] }
  0x18   :  { %165 = vmatpush.msra.mxu1 %v158_v2  ;;  %212 = vmatpush.msra.mxu2 %v209_v7  ;;  %v207_v14 = vld [vmem:[#allocation10 + $0x60] sm:$0xff]  ;;  %v152_v16 = vld [vmem:[#allocation9 + $0x38] sm:$0xff]  ;;  %v151_v19 = vld [vmem:[#allocation9 + $0x30] sm:$0xff] }
  0x19   :  { %108 = vmatpush.msra.mxu0 %v105_v9  ;;  %262 = vmatpush.msra.mxu3 %v105_v9  ;;  %v103_v15 = vld [vmem:[#allocation7 + $0x60] sm:$0xff]  ;;  %v206_v17 = vld [vmem:[#allocation10 + $0x58] sm:$0xff]  ;;  %v205_v20 = vld [vmem:[#allocation10 + $0x50] sm:$0xff] }
  0x1a   :  { %166 = vmatpush.msra.mxu1 %v157_v3  ;;  %213 = vmatpush.msra.mxu2 %v208_v11  ;;  %v102_v18 = vld [vmem:[#allocation7 + $0x58] sm:$0xff]  ;;  %v101_v21 = vld [vmem:[#allocation7 + $0x50] sm:$0xff]  ;;  %v150_v22 = vld [vmem:[#allocation9 + $0x28] sm:$0xff] }
  0x1b   :  { %109 = vmatpush.msra.mxu0 %v104_v12  ;;  %263 = vmatpush.msra.mxu3 %v104_v12  ;;  %v204_v23 = vld [vmem:[#allocation10 + $0x48] sm:$0xff]  ;;  %v149_v25 = vld [vmem:[#allocation9 + $0x20] sm:$0xff]  ;;  %v148_v28 = vld [vmem:[#allocation9 + $0x18] sm:$0xff] }
  0x1c   :  { %167 = vmatpush.msra.mxu1 %v156_v4  ;;  %214 = vmatpush.msra.mxu2 %v207_v14  ;;  %v100_v24 = vld [vmem:[#allocation7 + $0x48] sm:$0xff]  ;;  %v203_v26 = vld [vmem:[#allocation10 + $0x40] sm:$0xff]  ;;  %v202_v29 = vld [vmem:[#allocation10 + $0x38] sm:$0xff] }
  0x1d   :  { %110 = vmatpush.msra.mxu0 %v103_v15  ;;  %264 = vmatpush.msra.mxu3 %v103_v15  ;;  %v99_v27 = vld [vmem:[#allocation7 + $0x40] sm:$0xff]  ;;  %v98_v30 = vld [vmem:[#allocation7 + $0x38] sm:$0xff]  ;;  %v147_v31 = vld [vmem:[#allocation9 + $0x10] sm:$0xff] }
  0x1e   :  { %168 = vmatpush.msra.mxu1 %v155_v5  ;;  %215 = vmatpush.msra.mxu2 %v206_v17  ;;  %v201_v32 = vld [vmem:[#allocation10 + $0x30] sm:$0xff]  ;;  %v146_v34 = vld [vmem:[#allocation9 + $0x8] sm:$0xff]  ;;  %v145_v37 = vld [vmem:[#allocation9] sm:$0xff] }
  0x1f   :  { %111 = vmatpush.msra.mxu0 %v102_v18  ;;  %265 = vmatpush.msra.mxu3 %v102_v18  ;;  %v97_v33 = vld [vmem:[#allocation7 + $0x30] sm:$0xff]  ;;  %v200_v35 = vld [vmem:[#allocation10 + $0x28] sm:$0xff]  ;;  %v199_v38 = vld [vmem:[#allocation10 + $0x20] sm:$0xff] }
  0x20   :  { %169 = vmatpush.msra.mxu1 %v154_v10  ;;  %216 = vmatpush.msra.mxu2 %v205_v20  ;;  %v96_v36 = vld [vmem:[#allocation7 + $0x28] sm:$0xff]  ;;  %v81_v39 = vld [vmem:[#allocation4] sm:$0xff]  ;;  %v95_v40 = vld [vmem:[#allocation7 + $0x20] sm:$0xff] }
  0x21   :  { %112 = vmatpush.msra.mxu0 %v101_v21  ;;  %266 = vmatpush.msra.mxu3 %v101_v21  ;;  %v198_v41 = vld [vmem:[#allocation10 + $0x18] sm:$0xff]  ;;  %v197_v43 = vld [vmem:[#allocation10 + $0x10] sm:$0xff]  ;;  %v196_v44 = vld [vmem:[#allocation10 + $0x8] sm:$0xff] }
  0x22   :  { %170 = vmatpush.msra.mxu1 %v153_v13  ;;  %217 = vmatpush.msra.mxu2 %v204_v23  ;;  %v94_v42 = vld [vmem:[#allocation7 + $0x18] sm:$0xff]  ;;  %v195_v46 = vld [vmem:[#allocation10] sm:$0xff]  ;;  %v93_v47 = vld [vmem:[#allocation7 + $0x10] sm:$0xff] }
  0x23   :  { %113 = vmatpush.msra.mxu0 %v100_v24  ;;  %267 = vmatpush.msra.mxu3 %v100_v24  ;;  %v82_v45 = vld [vmem:[#allocation4 + $0x8] sm:$0xff]  ;;  %v92_v48 = vld [vmem:[#allocation7 + $0x8] sm:$0xff]  ;;  %v91_v49 = vld [vmem:[#allocation7] sm:$0xff] }
  0x24   :  { %171 = vmatpush.msra.mxu1 %v152_v16  ;;  %218 = vmatpush.msra.mxu2 %v203_v26 }
  0x25   :  { %114 = vmatpush.msra.mxu0 %v99_v27  ;;  %268 = vmatpush.msra.mxu3 %v99_v27 }
  0x26   :  { %172 = vmatpush.msra.mxu1 %v151_v19  ;;  %219 = vmatpush.msra.mxu2 %v202_v29 }
  0x27   :  { %115 = vmatpush.msra.mxu0 %v98_v30  ;;  %269 = vmatpush.msra.mxu3 %v98_v30 }
  0x28   :  { %173 = vmatpush.msra.mxu1 %v150_v22  ;;  %220 = vmatpush.msra.mxu2 %v201_v32 }
  0x29   :  { %116 = vmatpush.msra.mxu0 %v97_v33  ;;  %270 = vmatpush.msra.mxu3 %v97_v33 }
  0x2a   :  { %174 = vmatpush.msra.mxu1 %v149_v25  ;;  %221 = vmatpush.msra.mxu2 %v200_v35 }
  0x2b   :  { %117 = vmatpush.msra.mxu0 %v96_v36  ;;  %271 = vmatpush.msra.mxu3 %v96_v36 }
  0x2c   :  { %175 = vmatpush.msra.mxu1 %v148_v28  ;;  %222 = vmatpush.msra.mxu2 %v199_v38 }
  0x2d   :  { %118 = vmatpush.msra.mxu0 %v95_v40  ;;  %272 = vmatpush.msra.mxu3 %v95_v40 }
  0x2e   :  { %176 = vmatpush.msra.mxu1 %v147_v31  ;;  %223 = vmatpush.msra.mxu2 %v198_v41 }
  0x2f   :  { %119 = vmatpush.msra.mxu0 %v94_v42  ;;  %273 = vmatpush.msra.mxu3 %v94_v42 }
  0x30   :  { %177 = vmatpush.msra.mxu1 %v146_v34  ;;  %224 = vmatpush.msra.mxu2 %v197_v43 }
  0x31   :  { %120 = vmatpush.msra.mxu0 %v93_v47  ;;  %274 = vmatpush.msra.mxu3 %v93_v47 }
  0x32   :  { %178 = vmatpush.msra.mxu1 %v145_v37  ;;  %225 = vmatpush.msra.mxu2 %v196_v44 }
  0x33   :  { %179 = vmatmul.f32.vlgmr.msra.gmra.mxu1 %v81_v39  ;;  %121 = vmatpush.msra.mxu0 %v92_v48 }
  0x34   :  { %226 = vmatpush.msra.mxu2 %v195_v46  ;;  %275 = vmatpush.msra.mxu3 %v92_v48 }
  0x35   :  { %122 = vmatpush.msra.mxu0 %v91_v49 }
  0x36   :  { %276 = vmatpush.msra.mxu3 %v91_v49  ;;  %123 = vmatmul.f32.vlgmr.msra.gmra.mxu0 %v81_v39 }
  0x37   :  { %126 = vmatmul.f32.vlgmr.msra.gmra.mxu3 %v82_v45 }
  0x3b   :  { %182 = vmatmul.f32.gmra.mxu1 %v82_v45 }
  0xb0   :  { %v180_v50 = vpop.f32.mrf.mxu1 }
  0xb1   :  { %227 = vmatmul.f32.vlgmr.msra.gmra.mxu2 %v180_v50 }
  0xb3   :  { %v124_v52 = vpop.f32.mrf.mxu0 }
  0xb8   :  { %v183_v51 = vpop.f32.mrf.mxu1 }
  0xb9   :  { %230 = vmatmul.f32.gmra.mxu2 %v183_v51 }
  0xba   :  { %v127_v55 = vpop.f32.mrf.mxu3 }
 0x134   :  { %v228_v53 = vpop.f32.mrf.mxu2 }
 0x135   :  { %v236_v54 = vadd.f32 %v228_v53, %v124_v52 }
 0x137   :  { %238 = vst [vmem:[#allocation12] sm:$0xff] %v236_v54 }
 0x13c   :  { %v231_v56 = vpop.f32.mrf.mxu2 }
 0x13d   :  { %v237_v57 = vadd.f32 %v231_v56, %v127_v55 }
 0x13f   :  { %239 = vst [vmem:[#allocation12 + $0x8] sm:$0xff] %v237_v57 }
 0x140   :  { %252 = dma.vmem_to_hbm [thread:$0]  %s245_s8, 256, %s247_s11, [#allocation6], %s413_s23, %s413_s23, %s414_s24  }
 0x141   :  { %410 = dma.done.wait [#allocation6], 256  }
 0x142   :  { %411 = vsyncadd [#allocation6], 4294967040 }
 0x143   :  { %257 = vsyncpa [#allocation5], 1 }
 0x144   :  { %258 = vsyncpa [#allocation8], 1 }
 0x145   :  { %259 = vsyncpa [#allocation11], 1 }
 0x146   :  { %260 = vsyncpa [#allocation6], 1 }

</bundles_post_ra>
